<compile_context>
chip_gen: v7x
topology: tpu7x:2x2x1
jax: 0.10.0
libtpu: 0.0.40
codegen_flags: <defaults>
</compile_context>

<pallas_src>
import jax
import jax.numpy as jnp
from jax.experimental import pallas as pl
from jax.experimental.pallas import tpu as pltpu

STATE_DIM = 16
ACTION_DIM = 4
HIDDEN = 32            # hidden_dim (small test size; module default is 512)
H2 = HIDDEN // 2
H4 = HIDDEN // 4
EPS = 1e-5             # PyTorch nn.LayerNorm default eps

TB_MAX = 512           # batch rows per grid step (review: sweep 256/512/1024)
OUT_W = 8              # packed output lanes: [mean(4) | value(1) | pad(3)]

# Packed-vector row indices (rows padded to width HIDDEN; 2*H2 == HIDDEN).
# 0..11 : backbone  [b, gamma, beta] x 4
# 12..14: coop      [b, gamma, beta]
# 15    : combined-layer bias  [ba1 | bv1]
# 16..17: actor LN   [gamma, beta]
# 18..19: critic LN1 [gamma, beta]
# 20..22: critic     [bv2, gamma2, beta2]
# 23    : head bias  [ba2(4) | bv3(1) | 0 pad]
N_VEC = 24


def actor_critic_kernel(
    state_ref, vec_ref,
    w1, w2, w3, w4, w_feats, w_coop, wv2, w_head,
    out_ref,
):
    vec = vec_ref[...]                       # (N_VEC, HIDDEN) f32, loaded once

    def row(i, width):
        return vec[i:i + 1, :width]          # (1, width) broadcast against batch

    def lin(x, w_ref, b):
        # bf16 MXU matmul, f32 accumulate; element-wise math stays f32.
        return jnp.dot(x.astype(jnp.bfloat16), w_ref[...],
                       preferred_element_type=jnp.float32) + b

    def layernorm(x, g, b):
        # One-pass statistics: both cross-lane reductions issue back-to-back.
        mu = jnp.mean(x, axis=-1, keepdims=True)
        ms = jnp.mean(x * x, axis=-1, keepdims=True)
        var = jnp.maximum(ms - mu * mu, 0.0)          # guard tiny negative
        return (x - mu) * jax.lax.rsqrt(var + EPS) * g + b

    x = state_ref[...]

    # ---- feature backbone (Dropout = identity at inference) ----
    h = jnp.maximum(layernorm(lin(x, w1, row(0, HIDDEN)), row(1, HIDDEN), row(2, HIDDEN)), 0.0)
    h = jnp.maximum(layernorm(lin(h, w2, row(3, HIDDEN)), row(4, HIDDEN), row(5, HIDDEN)), 0.0)
    h = jnp.maximum(layernorm(lin(h, w3, row(6, HIDDEN)), row(7, HIDDEN), row(8, HIDDEN)), 0.0)
    feats = jnp.maximum(layernorm(lin(h, w4, row(9, HIDDEN)), row(10, HIDDEN), row(11, HIDDEN)), 0.0)

    # ---- fused feats matmul: [coop pre-LN | feats part of combined] ----
    fused = jnp.dot(feats.astype(jnp.bfloat16), w_feats[...],
                    preferred_element_type=jnp.float32)        # (TB, H2 + 2*H2)
    coop_pre = fused[:, :H2] + row(12, H2)
    coop = jnp.maximum(layernorm(coop_pre, row(13, H2), row(14, H2)), 0.0)

    # combined = concat([feats, coop]) @ [wa1 | wv1] + [ba1 | bv1], concat-free.
    combined = (fused[:, H2:]
                + jnp.dot(coop.astype(jnp.bfloat16), w_coop[...],
                          preferred_element_type=jnp.float32)
                + row(15, 2 * H2))
    a_pre = combined[:, :H2]
    v_pre = combined[:, H2:]

    # ---- actor head (up to final linear) ----
    a = jnp.maximum(layernorm(a_pre, row(16, H2), row(17, H2)), 0.0)

    # ---- critic head (up to final linear) ----
    v = jnp.maximum(layernorm(v_pre, row(18, H2), row(19, H2)), 0.0)
    v2 = jnp.maximum(layernorm(lin(v, wv2, row(20, H4)), row(21, H4), row(22, H4)), 0.0)

    # ---- block-diagonal packed head: one tile = [mean_pre | value | 0 pad] ----
    wh = w_head[...]                                            # (H2+H4, OUT_W) bf16
    head = (jnp.dot(a.astype(jnp.bfloat16), wh[:H2, :], preferred_element_type=jnp.float32)
            + jnp.dot(v2.astype(jnp.bfloat16), wh[H2:, :], preferred_element_type=jnp.float32)
            + row(23, OUT_W))
    lane = jax.lax.broadcasted_iota(jnp.int32, head.shape, 1)
    out_ref[...] = jnp.where(lane < ACTION_DIM, jnp.tanh(head), head)


# --------------------------------------------------------------------------
# Parameter construction (mirrors PyTorch init: orthogonal(gain=0.01) linear
# weights, zero biases, LayerNorm weight=1 / bias=0).
# --------------------------------------------------------------------------
def _orthogonal(key, rows, cols, gain=0.01):
    a = jax.random.normal(key, (max(rows, cols), min(rows, cols)), jnp.float32)
    q, r = jnp.linalg.qr(a)
    d = jnp.sign(jnp.diag(r))
    d = jnp.where(d == 0, 1.0, d)
    q = q * d[None, :]
    if rows < cols:
        q = q.T
    return gain * q[:rows, :cols].astype(jnp.float32)


def init_params(key):
    dims = [
        ("w1", STATE_DIM, HIDDEN), ("w2", HIDDEN, HIDDEN),
        ("w3", HIDDEN, HIDDEN), ("w4", HIDDEN, HIDDEN),
        ("wc", HIDDEN, H2),
        ("wa1", HIDDEN + H2, H2), ("wa2", H2, ACTION_DIM),
        ("wv1", HIDDEN + H2, H2), ("wv2", H2, H4), ("wv3", H4, 1),
    ]
    keys = jax.random.split(key, len(dims))
    W = {name: _orthogonal(k, din, dout) for (name, din, dout), k in zip(dims, keys)}

    # Fusion 1: everything consuming `feats` in one matmul.
    #   cols 0..H2-1       -> cooperation-enhancer pre-LN       (wc)
    #   cols H2..H2+2*H2-1 -> feats contribution to `combined`  ([wa1|wv1] top rows)
    w_feats = jnp.concatenate([W["wc"], W["wa1"][:HIDDEN], W["wv1"][:HIDDEN]], axis=1)
    # coop contribution to `combined`
    w_coop = jnp.concatenate([W["wa1"][HIDDEN:], W["wv1"][HIDDEN:]], axis=1)
    # Fusion 2: block-diagonal head weight producing packed [mean | value | pad].
    w_head = jnp.zeros((H2 + H4, OUT_W), jnp.float32)
    w_head = w_head.at[:H2, :ACTION_DIM].set(W["wa2"])
    w_head = w_head.at[H2:, ACTION_DIM:ACTION_DIM + 1].set(W["wv3"])

    weights = [W["w1"], W["w2"], W["w3"], W["w4"], w_feats, w_coop, W["wv2"], w_head]
    weights = [w.astype(jnp.bfloat16) for w in weights]

    # Packed bias / LayerNorm vectors (see row layout above).
    zeros = lambda n: jnp.zeros((n,), jnp.float32)
    ones = lambda n: jnp.ones((n,), jnp.float32)
    rows = []
    for _ in range(4):                                   # backbone: b, gamma, beta
        rows += [zeros(HIDDEN), ones(HIDDEN), zeros(HIDDEN)]
    rows += [zeros(H2), ones(H2), zeros(H2)]             # coop: b, gamma, beta
    rows += [zeros(2 * H2)]                              # combined bias [ba1 | bv1]
    rows += [ones(H2), zeros(H2)]                        # actor LN gamma, beta
    rows += [ones(H2), zeros(H2)]                        # critic LN1 gamma, beta
    rows += [zeros(H4), ones(H4), zeros(H4)]             # critic: bv2, gamma2, beta2
    rows += [zeros(OUT_W)]                               # head bias [ba2 | bv3 | 0]
    vec_pack = jnp.stack([jnp.pad(r, (0, HIDDEN - r.shape[0])) for r in rows])
    assert vec_pack.shape == (N_VEC, HIDDEN)

    log_std = jnp.full((ACTION_DIM,), -0.5, jnp.float32)
    return log_std, vec_pack, weights


# --------------------------------------------------------------------------
# Wrapper
# --------------------------------------------------------------------------
def stabilized_actor_critic_forward(state, log_std, vec_pack, weights):
    batch = state.shape[0]
    # Big batch tile (review: 512) for real workloads; for tiny test batches
    # use a single right-sized tile (multiple of 8) instead of padding to 512.
    tb = min(TB_MAX, ((batch + 7) // 8) * 8)
    padded_batch = ((batch + tb - 1) // tb) * tb
    state_padded = jnp.pad(state, ((0, padded_batch - batch), (0, 0)))
    n_tiles = padded_batch // tb

    in_specs = (
        [pl.BlockSpec((tb, STATE_DIM), lambda i: (i, 0)),     # batch-tiled state
         pl.BlockSpec(vec_pack.shape, lambda i: (0, 0))]      # VMEM-resident vectors
        + [pl.BlockSpec(w.shape, lambda i: (0, 0)) for w in weights]  # resident weights
    )
    out_specs = pl.BlockSpec((tb, OUT_W), lambda i: (i, 0))   # narrow packed output

    fn = pl.pallas_call(
        actor_critic_kernel,
        out_shape=jax.ShapeDtypeStruct((padded_batch, OUT_W), jnp.float32),
        grid=(n_tiles,),
        in_specs=in_specs,
        out_specs=out_specs,
        compiler_params=pltpu.CompilerParams(
            dimension_semantics=("parallel",),
        ),
    )
    packed = fn(state_padded, vec_pack, *weights)

    mean = packed[:batch, :ACTION_DIM]
    value = packed[:batch, ACTION_DIM:ACTION_DIM + 1]
    # batch-independent 4-element work kept out of the kernel:
    std = jnp.exp(jnp.clip(log_std, -20.0, 2.0))
    return mean, std, value


if __name__ == "__main__":
    key = jax.random.PRNGKey(0)
    k_state, k_params = jax.random.split(key)

    batch = 2
    state = jax.random.normal(k_state, (batch, STATE_DIM), jnp.float32)
    log_std, vec_pack, weights = init_params(k_params)

    mean, std, value = stabilized_actor_critic_forward(state, log_std, vec_pack, weights)
    jax.block_until_ready((mean, std, value))

    assert mean.shape == (batch, ACTION_DIM)
    assert std.shape == (ACTION_DIM,)
    assert value.shape == (batch, 1)
    assert bool(jnp.all(jnp.isfinite(mean)))
    assert bool(jnp.all(jnp.isfinite(std)))
    assert bool(jnp.all(jnp.isfinite(value)))

    print("KERNEL_OK")
</pallas_src>

<mosaic_0001>
module attributes {stable_mosaic.version = 11 : i64} {
  func.func @actor_critic_kernel(%arg0: i32, %arg1: memref<8x16xf32, #tpu.memory_space<vmem>>, %arg2: memref<24x32xf32, #tpu.memory_space<vmem>>, %arg3: memref<16x32xbf16, #tpu.memory_space<vmem>>, %arg4: memref<32x32xbf16, #tpu.memory_space<vmem>>, %arg5: memref<32x32xbf16, #tpu.memory_space<vmem>>, %arg6: memref<32x32xbf16, #tpu.memory_space<vmem>>, %arg7: memref<32x48xbf16, #tpu.memory_space<vmem>>, %arg8: memref<16x32xbf16, #tpu.memory_space<vmem>>, %arg9: memref<16x8xbf16, #tpu.memory_space<vmem>>, %arg10: memref<24x8xbf16, #tpu.memory_space<vmem>>, %arg11: memref<8x8xf32, #tpu.memory_space<vmem>>) attributes {dimension_semantics = [#tpu.dimension_semantics<parallel>], iteration_bounds = array<i64: 1>, scalar_prefetch = 0 : i64, scratch_operands = 0 : i64, tpu.core_type = #tpu.core_type<tc>, window_params = [{transform_indices = @transform_0, window_bounds = array<i64: 8, 16>}, {pipeline_mode = #tpu.pipeline_mode<synchronous>, transform_indices = @transform_1, window_bounds = array<i64: 24, 32>}, {pipeline_mode = #tpu.pipeline_mode<synchronous>, transform_indices = @transform_2, window_bounds = array<i64: 16, 32>}, {pipeline_mode = #tpu.pipeline_mode<synchronous>, transform_indices = @transform_3, window_bounds = array<i64: 32, 32>}, {pipeline_mode = #tpu.pipeline_mode<synchronous>, transform_indices = @transform_4, window_bounds = array<i64: 32, 32>}, {pipeline_mode = #tpu.pipeline_mode<synchronous>, transform_indices = @transform_5, window_bounds = array<i64: 32, 32>}, {pipeline_mode = #tpu.pipeline_mode<synchronous>, transform_indices = @transform_6, window_bounds = array<i64: 32, 48>}, {pipeline_mode = #tpu.pipeline_mode<synchronous>, transform_indices = @transform_7, window_bounds = array<i64: 16, 32>}, {pipeline_mode = #tpu.pipeline_mode<synchronous>, transform_indices = @transform_8, window_bounds = array<i64: 16, 8>}, {pipeline_mode = #tpu.pipeline_mode<synchronous>, transform_indices = @transform_9, window_bounds = array<i64: 24, 8>}, {transform_indices = @transform_10, window_bounds = array<i64: 8, 8>}]} {
    %c0 = arith.constant 0 : index
    %c0_0 = arith.constant 0 : index
    %0 = vector.load %arg2[%c0, %c0_0] : memref<24x32xf32, #tpu.memory_space<vmem>>, vector<24x32xf32>
    %c0_1 = arith.constant 0 : index
    %c0_2 = arith.constant 0 : index
    %1 = vector.load %arg1[%c0_1, %c0_2] : memref<8x16xf32, #tpu.memory_space<vmem>>, vector<8x16xf32>
    %2 = vector.extract_strided_slice %0 {offsets = [0, 0], sizes = [1, 32], strides = [1, 1]} : vector<24x32xf32> to vector<1x32xf32>
    %3 = arith.truncf %1 : vector<8x16xf32> to vector<8x16xbf16>
    %c0_3 = arith.constant 0 : index
    %c0_4 = arith.constant 0 : index
    %4 = vector.load %arg3[%c0_3, %c0_4] : memref<16x32xbf16, #tpu.memory_space<vmem>>, vector<16x32xbf16>
    %cst = arith.constant dense<0.000000e+00> : vector<8x32xf32>
    %5 = tpu.matmul %3, %4, %cst {dimension_numbers = #tpu.dot_dimension_numbers<[1], [0], [0], [1], [0, 0, 1, 1], [], []>} : vector<8x16xbf16>, vector<16x32xbf16>, vector<8x32xf32> -> vector<8x32xf32>
    %6 = vector.broadcast %2 : vector<1x32xf32> to vector<8x32xf32>
    %7 = arith.addf %5, %6 : vector<8x32xf32>
    %8 = vector.extract_strided_slice %0 {offsets = [1, 0], sizes = [1, 32], strides = [1, 1]} : vector<24x32xf32> to vector<1x32xf32>
    %9 = vector.extract_strided_slice %0 {offsets = [2, 0], sizes = [1, 32], strides = [1, 1]} : vector<24x32xf32> to vector<1x32xf32>
    %cst_5 = arith.constant dense<0.000000e+00> : vector<8xf32>
    %10 = vector.multi_reduction <add>, %7, %cst_5 [1] : vector<8x32xf32> to vector<8xf32>
    %11 = vector.shape_cast %10 : vector<8xf32> to vector<8x1xf32>
    %cst_6 = arith.constant 3.200000e+01 : f32
    %12 = vector.broadcast %cst_6 : f32 to vector<8x1xf32>
    %13 = arith.divf %11, %12 : vector<8x1xf32>
    %14 = arith.mulf %7, %7 : vector<8x32xf32>
    %cst_7 = arith.constant dense<0.000000e+00> : vector<8xf32>
    %15 = vector.multi_reduction <add>, %14, %cst_7 [1] : vector<8x32xf32> to vector<8xf32>
    %16 = vector.shape_cast %15 : vector<8xf32> to vector<8x1xf32>
    %cst_8 = arith.constant 3.200000e+01 : f32
    %17 = vector.broadcast %cst_8 : f32 to vector<8x1xf32>
    %18 = arith.divf %16, %17 : vector<8x1xf32>
    %19 = arith.mulf %13, %13 : vector<8x1xf32>
    %20 = arith.subf %18, %19 : vector<8x1xf32>
    %cst_9 = arith.constant 0.000000e+00 : f32
    %21 = vector.broadcast %cst_9 : f32 to vector<8x1xf32>
    %22 = arith.maximumf %20, %21 : vector<8x1xf32>
    %23 = vector.broadcast %13 : vector<8x1xf32> to vector<8x32xf32>
    %24 = arith.subf %7, %23 : vector<8x32xf32>
    %cst_10 = arith.constant 9.99999974E-6 : f32
    %25 = vector.broadcast %cst_10 : f32 to vector<8x1xf32>
    %26 = arith.addf %22, %25 : vector<8x1xf32>
    %27 = math.rsqrt %26 : vector<8x1xf32>
    %28 = vector.broadcast %27 : vector<8x1xf32> to vector<8x32xf32>
    %29 = arith.mulf %24, %28 : vector<8x32xf32>
    %30 = vector.broadcast %8 : vector<1x32xf32> to vector<8x32xf32>
    %31 = arith.mulf %29, %30 : vector<8x32xf32>
    %32 = vector.broadcast %9 : vector<1x32xf32> to vector<8x32xf32>
    %33 = arith.addf %31, %32 : vector<8x32xf32>
    %cst_11 = arith.constant 0.000000e+00 : f32
    %34 = vector.broadcast %cst_11 : f32 to vector<8x32xf32>
    %35 = arith.maximumf %33, %34 : vector<8x32xf32>
    %36 = vector.extract_strided_slice %0 {offsets = [3, 0], sizes = [1, 32], strides = [1, 1]} : vector<24x32xf32> to vector<1x32xf32>
    %37 = arith.truncf %35 : vector<8x32xf32> to vector<8x32xbf16>
    %c0_12 = arith.constant 0 : index
    %c0_13 = arith.constant 0 : index
    %38 = vector.load %arg4[%c0_12, %c0_13] : memref<32x32xbf16, #tpu.memory_space<vmem>>, vector<32x32xbf16>
    %cst_14 = arith.constant dense<0.000000e+00> : vector<8x32xf32>
    %39 = tpu.matmul %37, %38, %cst_14 {dimension_numbers = #tpu.dot_dimension_numbers<[1], [0], [0], [1], [0, 0, 1, 1], [], []>} : vector<8x32xbf16>, vector<32x32xbf16>, vector<8x32xf32> -> vector<8x32xf32>
    %40 = vector.broadcast %36 : vector<1x32xf32> to vector<8x32xf32>
    %41 = arith.addf %39, %40 : vector<8x32xf32>
    %42 = vector.extract_strided_slice %0 {offsets = [4, 0], sizes = [1, 32], strides = [1, 1]} : vector<24x32xf32> to vector<1x32xf32>
    %43 = vector.extract_strided_slice %0 {offsets = [5, 0], sizes = [1, 32], strides = [1, 1]} : vector<24x32xf32> to vector<1x32xf32>
    %cst_15 = arith.constant dense<0.000000e+00> : vector<8xf32>
    %44 = vector.multi_reduction <add>, %41, %cst_15 [1] : vector<8x32xf32> to vector<8xf32>
    %45 = vector.shape_cast %44 : vector<8xf32> to vector<8x1xf32>
    %cst_16 = arith.constant 3.200000e+01 : f32
    %46 = vector.broadcast %cst_16 : f32 to vector<8x1xf32>
    %47 = arith.divf %45, %46 : vector<8x1xf32>
    %48 = arith.mulf %41, %41 : vector<8x32xf32>
    %cst_17 = arith.constant dense<0.000000e+00> : vector<8xf32>
    %49 = vector.multi_reduction <add>, %48, %cst_17 [1] : vector<8x32xf32> to vector<8xf32>
    %50 = vector.shape_cast %49 : vector<8xf32> to vector<8x1xf32>
    %cst_18 = arith.constant 3.200000e+01 : f32
    %51 = vector.broadcast %cst_18 : f32 to vector<8x1xf32>
    %52 = arith.divf %50, %51 : vector<8x1xf32>
    %53 = arith.mulf %47, %47 : vector<8x1xf32>
    %54 = arith.subf %52, %53 : vector<8x1xf32>
    %cst_19 = arith.constant 0.000000e+00 : f32
    %55 = vector.broadcast %cst_19 : f32 to vector<8x1xf32>
    %56 = arith.maximumf %54, %55 : vector<8x1xf32>
    %57 = vector.broadcast %47 : vector<8x1xf32> to vector<8x32xf32>
    %58 = arith.subf %41, %57 : vector<8x32xf32>
    %cst_20 = arith.constant 9.99999974E-6 : f32
    %59 = vector.broadcast %cst_20 : f32 to vector<8x1xf32>
    %60 = arith.addf %56, %59 : vector<8x1xf32>
    %61 = math.rsqrt %60 : vector<8x1xf32>
    %62 = vector.broadcast %61 : vector<8x1xf32> to vector<8x32xf32>
    %63 = arith.mulf %58, %62 : vector<8x32xf32>
    %64 = vector.broadcast %42 : vector<1x32xf32> to vector<8x32xf32>
    %65 = arith.mulf %63, %64 : vector<8x32xf32>
    %66 = vector.broadcast %43 : vector<1x32xf32> to vector<8x32xf32>
    %67 = arith.addf %65, %66 : vector<8x32xf32>
    %cst_21 = arith.constant 0.000000e+00 : f32
    %68 = vector.broadcast %cst_21 : f32 to vector<8x32xf32>
    %69 = arith.maximumf %67, %68 : vector<8x32xf32>
    %70 = vector.extract_strided_slice %0 {offsets = [6, 0], sizes = [1, 32], strides = [1, 1]} : vector<24x32xf32> to vector<1x32xf32>
    %71 = arith.truncf %69 : vector<8x32xf32> to vector<8x32xbf16>
    %c0_22 = arith.constant 0 : index
    %c0_23 = arith.constant 0 : index
    %72 = vector.load %arg5[%c0_22, %c0_23] : memref<32x32xbf16, #tpu.memory_space<vmem>>, vector<32x32xbf16>
    %cst_24 = arith.constant dense<0.000000e+00> : vector<8x32xf32>
    %73 = tpu.matmul %71, %72, %cst_24 {dimension_numbers = #tpu.dot_dimension_numbers<[1], [0], [0], [1], [0, 0, 1, 1], [], []>} : vector<8x32xbf16>, vector<32x32xbf16>, vector<8x32xf32> -> vector<8x32xf32>
    %74 = vector.broadcast %70 : vector<1x32xf32> to vector<8x32xf32>
    %75 = arith.addf %73, %74 : vector<8x32xf32>
    %76 = vector.extract_strided_slice %0 {offsets = [7, 0], sizes = [1, 32], strides = [1, 1]} : vector<24x32xf32> to vector<1x32xf32>
    %77 = vector.extract_strided_slice %0 {offsets = [8, 0], sizes = [1, 32], strides = [1, 1]} : vector<24x32xf32> to vector<1x32xf32>
    %cst_25 = arith.constant dense<0.000000e+00> : vector<8xf32>
    %78 = vector.multi_reduction <add>, %75, %cst_25 [1] : vector<8x32xf32> to vector<8xf32>
    %79 = vector.shape_cast %78 : vector<8xf32> to vector<8x1xf32>
    %cst_26 = arith.constant 3.200000e+01 : f32
    %80 = vector.broadcast %cst_26 : f32 to vector<8x1xf32>
    %81 = arith.divf %79, %80 : vector<8x1xf32>
    %82 = arith.mulf %75, %75 : vector<8x32xf32>
    %cst_27 = arith.constant dense<0.000000e+00> : vector<8xf32>
    %83 = vector.multi_reduction <add>, %82, %cst_27 [1] : vector<8x32xf32> to vector<8xf32>
    %84 = vector.shape_cast %83 : vector<8xf32> to vector<8x1xf32>
    %cst_28 = arith.constant 3.200000e+01 : f32
    %85 = vector.broadcast %cst_28 : f32 to vector<8x1xf32>
    %86 = arith.divf %84, %85 : vector<8x1xf32>
    %87 = arith.mulf %81, %81 : vector<8x1xf32>
    %88 = arith.subf %86, %87 : vector<8x1xf32>
    %cst_29 = arith.constant 0.000000e+00 : f32
    %89 = vector.broadcast %cst_29 : f32 to vector<8x1xf32>
    %90 = arith.maximumf %88, %89 : vector<8x1xf32>
    %91 = vector.broadcast %81 : vector<8x1xf32> to vector<8x32xf32>
    %92 = arith.subf %75, %91 : vector<8x32xf32>
    %cst_30 = arith.constant 9.99999974E-6 : f32
    %93 = vector.broadcast %cst_30 : f32 to vector<8x1xf32>
    %94 = arith.addf %90, %93 : vector<8x1xf32>
    %95 = math.rsqrt %94 : vector<8x1xf32>
    %96 = vector.broadcast %95 : vector<8x1xf32> to vector<8x32xf32>
    %97 = arith.mulf %92, %96 : vector<8x32xf32>
    %98 = vector.broadcast %76 : vector<1x32xf32> to vector<8x32xf32>
    %99 = arith.mulf %97, %98 : vector<8x32xf32>
    %100 = vector.broadcast %77 : vector<1x32xf32> to vector<8x32xf32>
    %101 = arith.addf %99, %100 : vector<8x32xf32>
    %cst_31 = arith.constant 0.000000e+00 : f32
    %102 = vector.broadcast %cst_31 : f32 to vector<8x32xf32>
    %103 = arith.maximumf %101, %102 : vector<8x32xf32>
    %104 = vector.extract_strided_slice %0 {offsets = [9, 0], sizes = [1, 32], strides = [1, 1]} : vector<24x32xf32> to vector<1x32xf32>
    %105 = arith.truncf %103 : vector<8x32xf32> to vector<8x32xbf16>
    %c0_32 = arith.constant 0 : index
    %c0_33 = arith.constant 0 : index
    %106 = vector.load %arg6[%c0_32, %c0_33] : memref<32x32xbf16, #tpu.memory_space<vmem>>, vector<32x32xbf16>
    %cst_34 = arith.constant dense<0.000000e+00> : vector<8x32xf32>
    %107 = tpu.matmul %105, %106, %cst_34 {dimension_numbers = #tpu.dot_dimension_numbers<[1], [0], [0], [1], [0, 0, 1, 1], [], []>} : vector<8x32xbf16>, vector<32x32xbf16>, vector<8x32xf32> -> vector<8x32xf32>
    %108 = vector.broadcast %104 : vector<1x32xf32> to vector<8x32xf32>
    %109 = arith.addf %107, %108 : vector<8x32xf32>
    %110 = vector.extract_strided_slice %0 {offsets = [10, 0], sizes = [1, 32], strides = [1, 1]} : vector<24x32xf32> to vector<1x32xf32>
    %111 = vector.extract_strided_slice %0 {offsets = [11, 0], sizes = [1, 32], strides = [1, 1]} : vector<24x32xf32> to vector<1x32xf32>
    %cst_35 = arith.constant dense<0.000000e+00> : vector<8xf32>
    %112 = vector.multi_reduction <add>, %109, %cst_35 [1] : vector<8x32xf32> to vector<8xf32>
    %113 = vector.shape_cast %112 : vector<8xf32> to vector<8x1xf32>
    %cst_36 = arith.constant 3.200000e+01 : f32
    %114 = vector.broadcast %cst_36 : f32 to vector<8x1xf32>
    %115 = arith.divf %113, %114 : vector<8x1xf32>
    %116 = arith.mulf %109, %109 : vector<8x32xf32>
    %cst_37 = arith.constant dense<0.000000e+00> : vector<8xf32>
    %117 = vector.multi_reduction <add>, %116, %cst_37 [1] : vector<8x32xf32> to vector<8xf32>
    %118 = vector.shape_cast %117 : vector<8xf32> to vector<8x1xf32>
    %cst_38 = arith.constant 3.200000e+01 : f32
    %119 = vector.broadcast %cst_38 : f32 to vector<8x1xf32>
    %120 = arith.divf %118, %119 : vector<8x1xf32>
    %121 = arith.mulf %115, %115 : vector<8x1xf32>
    %122 = arith.subf %120, %121 : vector<8x1xf32>
    %cst_39 = arith.constant 0.000000e+00 : f32
    %123 = vector.broadcast %cst_39 : f32 to vector<8x1xf32>
    %124 = arith.maximumf %122, %123 : vector<8x1xf32>
    %125 = vector.broadcast %115 : vector<8x1xf32> to vector<8x32xf32>
    %126 = arith.subf %109, %125 : vector<8x32xf32>
    %cst_40 = arith.constant 9.99999974E-6 : f32
    %127 = vector.broadcast %cst_40 : f32 to vector<8x1xf32>
    %128 = arith.addf %124, %127 : vector<8x1xf32>
    %129 = math.rsqrt %128 : vector<8x1xf32>
    %130 = vector.broadcast %129 : vector<8x1xf32> to vector<8x32xf32>
    %131 = arith.mulf %126, %130 : vector<8x32xf32>
    %132 = vector.broadcast %110 : vector<1x32xf32> to vector<8x32xf32>
    %133 = arith.mulf %131, %132 : vector<8x32xf32>
    %134 = vector.broadcast %111 : vector<1x32xf32> to vector<8x32xf32>
    %135 = arith.addf %133, %134 : vector<8x32xf32>
    %cst_41 = arith.constant 0.000000e+00 : f32
    %136 = vector.broadcast %cst_41 : f32 to vector<8x32xf32>
    %137 = arith.maximumf %135, %136 : vector<8x32xf32>
    %138 = arith.truncf %137 : vector<8x32xf32> to vector<8x32xbf16>
    %c0_42 = arith.constant 0 : index
    %c0_43 = arith.constant 0 : index
    %139 = vector.load %arg7[%c0_42, %c0_43] : memref<32x48xbf16, #tpu.memory_space<vmem>>, vector<32x48xbf16>
    %cst_44 = arith.constant dense<0.000000e+00> : vector<8x48xf32>
    %140 = tpu.matmul %138, %139, %cst_44 {dimension_numbers = #tpu.dot_dimension_numbers<[1], [0], [0], [1], [0, 0, 1, 1], [], []>} : vector<8x32xbf16>, vector<32x48xbf16>, vector<8x48xf32> -> vector<8x48xf32>
    %141 = vector.extract_strided_slice %140 {offsets = [0, 0], sizes = [8, 16], strides = [1, 1]} : vector<8x48xf32> to vector<8x16xf32>
    %142 = vector.extract_strided_slice %0 {offsets = [12, 0], sizes = [1, 16], strides = [1, 1]} : vector<24x32xf32> to vector<1x16xf32>
    %143 = vector.broadcast %142 : vector<1x16xf32> to vector<8x16xf32>
    %144 = arith.addf %141, %143 : vector<8x16xf32>
    %145 = vector.extract_strided_slice %0 {offsets = [13, 0], sizes = [1, 16], strides = [1, 1]} : vector<24x32xf32> to vector<1x16xf32>
    %146 = vector.extract_strided_slice %0 {offsets = [14, 0], sizes = [1, 16], strides = [1, 1]} : vector<24x32xf32> to vector<1x16xf32>
    %cst_45 = arith.constant dense<0.000000e+00> : vector<8xf32>
    %147 = vector.multi_reduction <add>, %144, %cst_45 [1] : vector<8x16xf32> to vector<8xf32>
    %148 = vector.shape_cast %147 : vector<8xf32> to vector<8x1xf32>
    %cst_46 = arith.constant 1.600000e+01 : f32
    %149 = vector.broadcast %cst_46 : f32 to vector<8x1xf32>
    %150 = arith.divf %148, %149 : vector<8x1xf32>
    %151 = arith.mulf %144, %144 : vector<8x16xf32>
    %cst_47 = arith.constant dense<0.000000e+00> : vector<8xf32>
    %152 = vector.multi_reduction <add>, %151, %cst_47 [1] : vector<8x16xf32> to vector<8xf32>
    %153 = vector.shape_cast %152 : vector<8xf32> to vector<8x1xf32>
    %cst_48 = arith.constant 1.600000e+01 : f32
    %154 = vector.broadcast %cst_48 : f32 to vector<8x1xf32>
    %155 = arith.divf %153, %154 : vector<8x1xf32>
    %156 = arith.mulf %150, %150 : vector<8x1xf32>
    %157 = arith.subf %155, %156 : vector<8x1xf32>
    %cst_49 = arith.constant 0.000000e+00 : f32
    %158 = vector.broadcast %cst_49 : f32 to vector<8x1xf32>
    %159 = arith.maximumf %157, %158 : vector<8x1xf32>
    %160 = vector.broadcast %150 : vector<8x1xf32> to vector<8x16xf32>
    %161 = arith.subf %144, %160 : vector<8x16xf32>
    %cst_50 = arith.constant 9.99999974E-6 : f32
    %162 = vector.broadcast %cst_50 : f32 to vector<8x1xf32>
    %163 = arith.addf %159, %162 : vector<8x1xf32>
    %164 = math.rsqrt %163 : vector<8x1xf32>
    %165 = vector.broadcast %164 : vector<8x1xf32> to vector<8x16xf32>
    %166 = arith.mulf %161, %165 : vector<8x16xf32>
    %167 = vector.broadcast %145 : vector<1x16xf32> to vector<8x16xf32>
    %168 = arith.mulf %166, %167 : vector<8x16xf32>
    %169 = vector.broadcast %146 : vector<1x16xf32> to vector<8x16xf32>
    %170 = arith.addf %168, %169 : vector<8x16xf32>
    %cst_51 = arith.constant 0.000000e+00 : f32
    %171 = vector.broadcast %cst_51 : f32 to vector<8x16xf32>
    %172 = arith.maximumf %170, %171 : vector<8x16xf32>
    %173 = vector.extract_strided_slice %140 {offsets = [0, 16], sizes = [8, 32], strides = [1, 1]} : vector<8x48xf32> to vector<8x32xf32>
    %174 = arith.truncf %172 : vector<8x16xf32> to vector<8x16xbf16>
    %c0_52 = arith.constant 0 : index
    %c0_53 = arith.constant 0 : index
    %175 = vector.load %arg8[%c0_52, %c0_53] : memref<16x32xbf16, #tpu.memory_space<vmem>>, vector<16x32xbf16>
    %cst_54 = arith.constant dense<0.000000e+00> : vector<8x32xf32>
    %176 = tpu.matmul %174, %175, %cst_54 {dimension_numbers = #tpu.dot_dimension_numbers<[1], [0], [0], [1], [0, 0, 1, 1], [], []>} : vector<8x16xbf16>, vector<16x32xbf16>, vector<8x32xf32> -> vector<8x32xf32>
    %177 = arith.addf %173, %176 : vector<8x32xf32>
    %178 = vector.extract_strided_slice %0 {offsets = [15, 0], sizes = [1, 32], strides = [1, 1]} : vector<24x32xf32> to vector<1x32xf32>
    %179 = vector.broadcast %178 : vector<1x32xf32> to vector<8x32xf32>
    %180 = arith.addf %177, %179 : vector<8x32xf32>
    %181 = vector.extract_strided_slice %180 {offsets = [0, 0], sizes = [8, 16], strides = [1, 1]} : vector<8x32xf32> to vector<8x16xf32>
    %182 = vector.extract_strided_slice %180 {offsets = [0, 16], sizes = [8, 16], strides = [1, 1]} : vector<8x32xf32> to vector<8x16xf32>
    %183 = vector.extract_strided_slice %0 {offsets = [16, 0], sizes = [1, 16], strides = [1, 1]} : vector<24x32xf32> to vector<1x16xf32>
    %184 = vector.extract_strided_slice %0 {offsets = [17, 0], sizes = [1, 16], strides = [1, 1]} : vector<24x32xf32> to vector<1x16xf32>
    %cst_55 = arith.constant dense<0.000000e+00> : vector<8xf32>
    %185 = vector.multi_reduction <add>, %181, %cst_55 [1] : vector<8x16xf32> to vector<8xf32>
    %186 = vector.shape_cast %185 : vector<8xf32> to vector<8x1xf32>
    %cst_56 = arith.constant 1.600000e+01 : f32
    %187 = vector.broadcast %cst_56 : f32 to vector<8x1xf32>
    %188 = arith.divf %186, %187 : vector<8x1xf32>
    %189 = arith.mulf %181, %181 : vector<8x16xf32>
    %cst_57 = arith.constant dense<0.000000e+00> : vector<8xf32>
    %190 = vector.multi_reduction <add>, %189, %cst_57 [1] : vector<8x16xf32> to vector<8xf32>
    %191 = vector.shape_cast %190 : vector<8xf32> to vector<8x1xf32>
    %cst_58 = arith.constant 1.600000e+01 : f32
    %192 = vector.broadcast %cst_58 : f32 to vector<8x1xf32>
    %193 = arith.divf %191, %192 : vector<8x1xf32>
    %194 = arith.mulf %188, %188 : vector<8x1xf32>
    %195 = arith.subf %193, %194 : vector<8x1xf32>
    %cst_59 = arith.constant 0.000000e+00 : f32
    %196 = vector.broadcast %cst_59 : f32 to vector<8x1xf32>
    %197 = arith.maximumf %195, %196 : vector<8x1xf32>
    %198 = vector.broadcast %188 : vector<8x1xf32> to vector<8x16xf32>
    %199 = arith.subf %181, %198 : vector<8x16xf32>
    %cst_60 = arith.constant 9.99999974E-6 : f32
    %200 = vector.broadcast %cst_60 : f32 to vector<8x1xf32>
    %201 = arith.addf %197, %200 : vector<8x1xf32>
    %202 = math.rsqrt %201 : vector<8x1xf32>
    %203 = vector.broadcast %202 : vector<8x1xf32> to vector<8x16xf32>
    %204 = arith.mulf %199, %203 : vector<8x16xf32>
    %205 = vector.broadcast %183 : vector<1x16xf32> to vector<8x16xf32>
    %206 = arith.mulf %204, %205 : vector<8x16xf32>
    %207 = vector.broadcast %184 : vector<1x16xf32> to vector<8x16xf32>
    %208 = arith.addf %206, %207 : vector<8x16xf32>
    %cst_61 = arith.constant 0.000000e+00 : f32
    %209 = vector.broadcast %cst_61 : f32 to vector<8x16xf32>
    %210 = arith.maximumf %208, %209 : vector<8x16xf32>
    %211 = vector.extract_strided_slice %0 {offsets = [18, 0], sizes = [1, 16], strides = [1, 1]} : vector<24x32xf32> to vector<1x16xf32>
    %212 = vector.extract_strided_slice %0 {offsets = [19, 0], sizes = [1, 16], strides = [1, 1]} : vector<24x32xf32> to vector<1x16xf32>
    %cst_62 = arith.constant dense<0.000000e+00> : vector<8xf32>
    %213 = vector.multi_reduction <add>, %182, %cst_62 [1] : vector<8x16xf32> to vector<8xf32>
    %214 = vector.shape_cast %213 : vector<8xf32> to vector<8x1xf32>
    %cst_63 = arith.constant 1.600000e+01 : f32
    %215 = vector.broadcast %cst_63 : f32 to vector<8x1xf32>
    %216 = arith.divf %214, %215 : vector<8x1xf32>
    %217 = arith.mulf %182, %182 : vector<8x16xf32>
    %cst_64 = arith.constant dense<0.000000e+00> : vector<8xf32>
    %218 = vector.multi_reduction <add>, %217, %cst_64 [1] : vector<8x16xf32> to vector<8xf32>
    %219 = vector.shape_cast %218 : vector<8xf32> to vector<8x1xf32>
    %cst_65 = arith.constant 1.600000e+01 : f32
    %220 = vector.broadcast %cst_65 : f32 to vector<8x1xf32>
    %221 = arith.divf %219, %220 : vector<8x1xf32>
    %222 = arith.mulf %216, %216 : vector<8x1xf32>
    %223 = arith.subf %221, %222 : vector<8x1xf32>
    %cst_66 = arith.constant 0.000000e+00 : f32
    %224 = vector.broadcast %cst_66 : f32 to vector<8x1xf32>
    %225 = arith.maximumf %223, %224 : vector<8x1xf32>
    %226 = vector.broadcast %216 : vector<8x1xf32> to vector<8x16xf32>
    %227 = arith.subf %182, %226 : vector<8x16xf32>
    %cst_67 = arith.constant 9.99999974E-6 : f32
    %228 = vector.broadcast %cst_67 : f32 to vector<8x1xf32>
    %229 = arith.addf %225, %228 : vector<8x1xf32>
    %230 = math.rsqrt %229 : vector<8x1xf32>
    %231 = vector.broadcast %230 : vector<8x1xf32> to vector<8x16xf32>
    %232 = arith.mulf %227, %231 : vector<8x16xf32>
    %233 = vector.broadcast %211 : vector<1x16xf32> to vector<8x16xf32>
    %234 = arith.mulf %232, %233 : vector<8x16xf32>
    %235 = vector.broadcast %212 : vector<1x16xf32> to vector<8x16xf32>
    %236 = arith.addf %234, %235 : vector<8x16xf32>
    %cst_68 = arith.constant 0.000000e+00 : f32
    %237 = vector.broadcast %cst_68 : f32 to vector<8x16xf32>
    %238 = arith.maximumf %236, %237 : vector<8x16xf32>
    %239 = vector.extract_strided_slice %0 {offsets = [20, 0], sizes = [1, 8], strides = [1, 1]} : vector<24x32xf32> to vector<1x8xf32>
    %240 = arith.truncf %238 : vector<8x16xf32> to vector<8x16xbf16>
    %c0_69 = arith.constant 0 : index
    %c0_70 = arith.constant 0 : index
    %241 = vector.load %arg9[%c0_69, %c0_70] : memref<16x8xbf16, #tpu.memory_space<vmem>>, vector<16x8xbf16>
    %cst_71 = arith.constant dense<0.000000e+00> : vector<8x8xf32>
    %242 = tpu.matmul %240, %241, %cst_71 {dimension_numbers = #tpu.dot_dimension_numbers<[1], [0], [0], [1], [0, 0, 1, 1], [], []>} : vector<8x16xbf16>, vector<16x8xbf16>, vector<8x8xf32> -> vector<8x8xf32>
    %243 = vector.broadcast %239 : vector<1x8xf32> to vector<8x8xf32>
    %244 = arith.addf %242, %243 : vector<8x8xf32>
    %245 = vector.extract_strided_slice %0 {offsets = [21, 0], sizes = [1, 8], strides = [1, 1]} : vector<24x32xf32> to vector<1x8xf32>
    %246 = vector.extract_strided_slice %0 {offsets = [22, 0], sizes = [1, 8], strides = [1, 1]} : vector<24x32xf32> to vector<1x8xf32>
    %cst_72 = arith.constant dense<0.000000e+00> : vector<8xf32>
    %247 = vector.multi_reduction <add>, %244, %cst_72 [1] : vector<8x8xf32> to vector<8xf32>
    %248 = vector.shape_cast %247 : vector<8xf32> to vector<8x1xf32>
    %cst_73 = arith.constant 8.000000e+00 : f32
    %249 = vector.broadcast %cst_73 : f32 to vector<8x1xf32>
    %250 = arith.divf %248, %249 : vector<8x1xf32>
    %251 = arith.mulf %244, %244 : vector<8x8xf32>
    %cst_74 = arith.constant dense<0.000000e+00> : vector<8xf32>
    %252 = vector.multi_reduction <add>, %251, %cst_74 [1] : vector<8x8xf32> to vector<8xf32>
    %253 = vector.shape_cast %252 : vector<8xf32> to vector<8x1xf32>
    %cst_75 = arith.constant 8.000000e+00 : f32
    %254 = vector.broadcast %cst_75 : f32 to vector<8x1xf32>
    %255 = arith.divf %253, %254 : vector<8x1xf32>
    %256 = arith.mulf %250, %250 : vector<8x1xf32>
    %257 = arith.subf %255, %256 : vector<8x1xf32>
    %cst_76 = arith.constant 0.000000e+00 : f32
    %258 = vector.broadcast %cst_76 : f32 to vector<8x1xf32>
    %259 = arith.maximumf %257, %258 : vector<8x1xf32>
    %260 = vector.broadcast %250 : vector<8x1xf32> to vector<8x8xf32>
    %261 = arith.subf %244, %260 : vector<8x8xf32>
    %cst_77 = arith.constant 9.99999974E-6 : f32
    %262 = vector.broadcast %cst_77 : f32 to vector<8x1xf32>
    %263 = arith.addf %259, %262 : vector<8x1xf32>
    %264 = math.rsqrt %263 : vector<8x1xf32>
    %265 = vector.broadcast %264 : vector<8x1xf32> to vector<8x8xf32>
    %266 = arith.mulf %261, %265 : vector<8x8xf32>
    %267 = vector.broadcast %245 : vector<1x8xf32> to vector<8x8xf32>
    %268 = arith.mulf %266, %267 : vector<8x8xf32>
    %269 = vector.broadcast %246 : vector<1x8xf32> to vector<8x8xf32>
    %270 = arith.addf %268, %269 : vector<8x8xf32>
    %cst_78 = arith.constant 0.000000e+00 : f32
    %271 = vector.broadcast %cst_78 : f32 to vector<8x8xf32>
    %272 = arith.maximumf %270, %271 : vector<8x8xf32>
    %c0_79 = arith.constant 0 : index
    %c0_80 = arith.constant 0 : index
    %273 = vector.load %arg10[%c0_79, %c0_80] : memref<24x8xbf16, #tpu.memory_space<vmem>>, vector<24x8xbf16>
    %274 = arith.truncf %210 : vector<8x16xf32> to vector<8x16xbf16>
    %275 = vector.extract_strided_slice %273 {offsets = [0, 0], sizes = [16, 8], strides = [1, 1]} : vector<24x8xbf16> to vector<16x8xbf16>
    %cst_81 = arith.constant dense<0.000000e+00> : vector<8x8xf32>
    %276 = tpu.matmul %274, %275, %cst_81 {dimension_numbers = #tpu.dot_dimension_numbers<[1], [0], [0], [1], [0, 0, 1, 1], [], []>} : vector<8x16xbf16>, vector<16x8xbf16>, vector<8x8xf32> -> vector<8x8xf32>
    %277 = arith.truncf %272 : vector<8x8xf32> to vector<8x8xbf16>
    %278 = vector.extract_strided_slice %273 {offsets = [16, 0], sizes = [8, 8], strides = [1, 1]} : vector<24x8xbf16> to vector<8x8xbf16>
    %cst_82 = arith.constant dense<0.000000e+00> : vector<8x8xf32>
    %279 = tpu.matmul %277, %278, %cst_82 {dimension_numbers = #tpu.dot_dimension_numbers<[1], [0], [0], [1], [0, 0, 1, 1], [], []>} : vector<8x8xbf16>, vector<8x8xbf16>, vector<8x8xf32> -> vector<8x8xf32>
    %280 = arith.addf %276, %279 : vector<8x8xf32>
    %281 = vector.extract_strided_slice %0 {offsets = [23, 0], sizes = [1, 8], strides = [1, 1]} : vector<24x32xf32> to vector<1x8xf32>
    %282 = vector.broadcast %281 : vector<1x8xf32> to vector<8x8xf32>
    %283 = arith.addf %280, %282 : vector<8x8xf32>
    %284 = tpu.iota {dimensions = array<i32: 1>} : vector<8x8xi32>
    %c4_i32 = arith.constant 4 : i32
    %285 = vector.broadcast %c4_i32 : i32 to vector<8x8xi32>
    %286 = arith.cmpi slt, %284, %285 : vector<8x8xi32>
    %287 = math.tanh %283 : vector<8x8xf32>
    %288 = arith.select %286, %287, %283 : vector<8x8xi1>, vector<8x8xf32>
    %c0_83 = arith.constant 0 : index
    %c0_84 = arith.constant 0 : index
    %289 = vector.load %arg11[%c0_83, %c0_84] : memref<8x8xf32, #tpu.memory_space<vmem>>, vector<8x8xf32>
    tpu.vector_store %arg11[%c0_83, %c0_84], %288 {strides = array<i32>} : memref<8x8xf32, #tpu.memory_space<vmem>>, vector<8x8xf32>,
    return
  }
  func.func @transform_0(%arg0: i32) -> (i32, i32) {
    %c0_i32 = arith.constant 0 : i32
    %c0_i32_0 = arith.constant 0 : i32
    return %arg0, %c0_i32 : i32, i32
  }
  func.func @transform_1(%arg0: i32) -> (i32, i32) {
    %c0_i32 = arith.constant 0 : i32
    %c0_i32_0 = arith.constant 0 : i32
    %c0_i32_1 = arith.constant 0 : i32
    return %c0_i32, %c0_i32_0 : i32, i32
  }
  func.func @transform_2(%arg0: i32) -> (i32, i32) {
    %c0_i32 = arith.constant 0 : i32
    %c0_i32_0 = arith.constant 0 : i32
    %c0_i32_1 = arith.constant 0 : i32
    return %c0_i32, %c0_i32_0 : i32, i32
  }
  func.func @transform_3(%arg0: i32) -> (i32, i32) {
    %c0_i32 = arith.constant 0 : i32
    %c0_i32_0 = arith.constant 0 : i32
    %c0_i32_1 = arith.constant 0 : i32
    return %c0_i32, %c0_i32_0 : i32, i32
  }
  func.func @transform_4(%arg0: i32) -> (i32, i32) {
    %c0_i32 = arith.constant 0 : i32
    %c0_i32_0 = arith.constant 0 : i32
    %c0_i32_1 = arith.constant 0 : i32
    return %c0_i32, %c0_i32_0 : i32, i32
  }
  func.func @transform_5(%arg0: i32) -> (i32, i32) {
    %c0_i32 = arith.constant 0 : i32
    %c0_i32_0 = arith.constant 0 : i32
    %c0_i32_1 = arith.constant 0 : i32
    return %c0_i32, %c0_i32_0 : i32, i32
  }
  func.func @transform_6(%arg0: i32) -> (i32, i32) {
    %c0_i32 = arith.constant 0 : i32
    %c0_i32_0 = arith.constant 0 : i32
    %c0_i32_1 = arith.constant 0 : i32
    return %c0_i32, %c0_i32_0 : i32, i32
  }
  func.func @transform_7(%arg0: i32) -> (i32, i32) {
    %c0_i32 = arith.constant 0 : i32
    %c0_i32_0 = arith.constant 0 : i32
    %c0_i32_1 = arith.constant 0 : i32
    return %c0_i32, %c0_i32_0 : i32, i32
  }
  func.func @transform_8(%arg0: i32) -> (i32, i32) {
    %c0_i32 = arith.constant 0 : i32
    %c0_i32_0 = arith.constant 0 : i32
    %c0_i32_1 = arith.constant 0 : i32
    return %c0_i32, %c0_i32_0 : i32, i32
  }
  func.func @transform_9(%arg0: i32) -> (i32, i32) {
    %c0_i32 = arith.constant 0 : i32
    %c0_i32_0 = arith.constant 0 : i32
    %c0_i32_1 = arith.constant 0 : i32
    return %c0_i32, %c0_i32_0 : i32, i32
  }
  func.func @transform_10(%arg0: i32) -> (i32, i32) {
    %c0_i32 = arith.constant 0 : i32
    %c0_i32_0 = arith.constant 0 : i32
    return %arg0, %c0_i32 : i32, i32
  }
}

</mosaic_0001>

<bundles_post_ra>
// kernel: tpu_custom_call.1
= control target key start
LH: loop header
LB: loop body
LE: loop exit
PB: predicated region body
PF: predicated region fallthrough
CT: control target
= control target key end

     0   :  { %15 = vsyncpa [#allocation3], 0  ;;  %s1554_s0 = inlined_call_operand.hbm [shape: f32[8,16], index: 0, kind: input, shape index: {}]   ;;  %s1555_s1 = inlined_call_operand.vmem [shape: f32[24,32], index: 1, kind: input, shape index: {}]   ;;  %s1556_s2 = inlined_call_operand.hbm [shape: bf16[16,32], index: 2, kind: input, shape index: {}]   ;;  %s1557_s3 = inlined_call_operand.hbm [shape: bf16[32,32], index: 3, kind: input, shape index: {}]   ;;  %s1558_s4 = inlined_call_operand.vmem [shape: bf16[32,32], index: 4, kind: input, shape index: {}]   ;;  %s1559_s5 = inlined_call_operand.hbm [shape: bf16[32,32], index: 5, kind: input, shape index: {}]   ;;  %s1560_s6 = inlined_call_operand.hbm [shape: bf16[32,48], index: 6, kind: input, shape index: {}]   ;;  %s1561_s7 = inlined_call_operand.vmem [shape: bf16[16,32], index: 7, kind: input, shape index: {}]   ;;  %s1562_s8 = inlined_call_operand.vmem [shape: bf16[16,8], index: 8, kind: input, shape index: {}]   ;;  %s1563_s9 = inlined_call_operand.vmem [shape: bf16[24,8], index: 9, kind: input, shape index: {}]   ;;  %s1564_s10 = inlined_call_operand.hbm [shape: f32[8,8], index: 10, kind: output, shape index: {}]  }
   0x1   :  { %16 = vsyncpa [#allocation6], 0 }
   0x2   :  { %17 = vsyncpa [#allocation9], 0 }
   0x3   :  { %18 = vsyncpa [#allocation4], 0  ;;  %s1217_s13 = smov [#allocation5]   ;;  %s1077_s17 = scalar_lea.hbm %s1556_s2, 128 }
   0x4   :  { %s36_s14 = sshll.u32 %s1217_s13, 4  ;;  %p1078_p0 = scmp.ne.s32.totalorder %s1556_s2, %s1077_s17  ;;  %s37_s14 = int_to_ptr.vmem [resolvable:$true] %s36_s14 }
   0x5   :  { %p1081_p1 = scmp.lt.u32.totalorder %s1077_s17, %s1556_s2 }
   0x7   :  { %p1083_p2 = pnand %p1081_p1, %p1078_p0 }
   0x9   :  { %1086 = shalt.err (!%p1083_p2)
}
   0xa   :  { %s1087_s22 = scalar_lea.vmem %s37_s14, 128  ;;  %p1092_p4 = scmp.lt.s32.totalorder %s37_s14, %s37_s14 }
   0xb   :  { %p1088_p3 = scmp.ne.s32.totalorder %s37_s14, %s1087_s22  ;;  %p1093_p5 = scmp.lt.s32.totalorder %s1087_s22, %s1087_s22 }
   0xd   :  { %p1094_p6 = por %p1093_p5, %p1092_p4 }
   0xf   :  { %p1095_p7 = pnand %p1094_p6, %p1088_p3 }
  0x11   :  { %1098 = shalt.err (!%p1095_p7)
}
  0x12   :  { %s1218_s23 = smov 64   ;;  %s1219_s24 = smov 4  }
  0x13   :  { %42 = dma.hbm_to_vmem [thread:$0]  %s1556_s2, 128, %s37_s14, [#allocation6], %s1218_s23, %s1218_s23, %s1219_s24  }
  0x14   :  { %s1220_s27 = smov [#allocation8]   ;;  %s1221_s29 = smov [#allocation2]  }
  0x15   :  { %s62_s28 = sshll.u32 %s1220_s27, 4  ;;  %s25_s30 = sshll.u32 %s1221_s29, 4  ;;  %s63_s28 = int_to_ptr.vmem [resolvable:$true] %s62_s28  ;;  %s26_s30 = int_to_ptr.vmem [resolvable:$true] %s25_s30 }
  0x16   :  { %s1099_s13 = scalar_lea.hbm %s1559_s5, 256 }
  0x17   :  { %p1100_p8 = scmp.ne.s32.totalorder %s1559_s5, %s1099_s13  ;;  %p1103_p9 = scmp.lt.u32.totalorder %s1099_s13, %s1559_s5 }
  0x19   :  { %p1105_p10 = pnand %p1103_p9, %p1100_p8 }
  0x1b   :  { %1108 = shalt.err (!%p1105_p10)
}
  0x1c   :  { %s1109_s2 = scalar_lea.vmem %s63_s28, 256  ;;  %p1114_p12 = scmp.lt.s32.totalorder %s63_s28, %s63_s28 }
  0x1d   :  { %p1110_p11 = scmp.ne.s32.totalorder %s63_s28, %s1109_s2  ;;  %p1115_p13 = scmp.lt.s32.totalorder %s1109_s2, %s1109_s2 }
  0x1f   :  { %p1116_p0 = por %p1115_p13, %p1114_p12 }
  0x21   :  { %p1117_p1 = pnand %p1116_p0, %p1110_p11 }
  0x23   :  { %1120 = shalt.err (!%p1117_p1)
}
  0x24   :  { %68 = dma.hbm_to_vmem [thread:$0]  %s1559_s5, 256, %s63_s28, [#allocation9], %s1218_s23, %s1218_s23, %s1219_s24  }
  0x25   :  { %s1121_s22 = scalar_lea.hbm %s1554_s0, 128 }
  0x26   :  { %p1122_p2 = scmp.ne.s32.totalorder %s1554_s0, %s1121_s22  ;;  %p1125_p3 = scmp.lt.u32.totalorder %s1121_s22, %s1554_s0 }
  0x28   :  { %p1127_p4 = pnand %p1125_p3, %p1122_p2 }
  0x2a   :  { %1130 = shalt.err (!%p1127_p4)
}
  0x2b   :  { %s1131_s11 = scalar_lea.vmem %s26_s30, 128  ;;  %p1136_p6 = scmp.lt.s32.totalorder %s26_s30, %s26_s30 }
  0x2c   :  { %p1132_p5 = scmp.ne.s32.totalorder %s26_s30, %s1131_s11  ;;  %p1137_p7 = scmp.lt.s32.totalorder %s1131_s11, %s1131_s11 }
  0x2e   :  { %p1138_p8 = por %p1137_p7, %p1136_p6 }
  0x30   :  { %p1139_p9 = pnand %p1138_p8, %p1132_p5 }
  0x32   :  { %1142 = shalt.err (!%p1139_p9)
}
  0x33   :  { %28 = dma.hbm_to_vmem [thread:$0]  %s1554_s0, 128, %s26_s30, [#allocation3]  }
  0x34   :  { %s1222_s12 = smov [#allocation7]   ;;  %s1223_s15 = smov [#allocation10]  }
  0x35   :  { %s48_s13 = sshll.u32 %s1222_s12, 4  ;;  %s74_s16 = sshll.u32 %s1223_s15, 4  ;;  %s49_s13 = int_to_ptr.vmem [resolvable:$true] %s48_s13  ;;  %s75_s16 = int_to_ptr.vmem [resolvable:$true] %s74_s16 }
  0x36   :  { %s1143_s2 = scalar_lea.hbm %s1557_s3, 256 }
  0x37   :  { %p1144_p10 = scmp.ne.s32.totalorder %s1557_s3, %s1143_s2  ;;  %p1147_p11 = scmp.lt.u32.totalorder %s1143_s2, %s1557_s3 }
  0x39   :  { %p1149_p12 = pnand %p1147_p11, %p1144_p10 }
  0x3b   :  { %1152 = shalt.err (!%p1149_p12)
}
  0x3c   :  { %s1153_s0 = scalar_lea.vmem %s49_s13, 256  ;;  %p1158_p0 = scmp.lt.s32.totalorder %s49_s13, %s49_s13 }
  0x3d   :  { %p1154_p13 = scmp.ne.s32.totalorder %s49_s13, %s1153_s0  ;;  %p1159_p1 = scmp.lt.s32.totalorder %s1153_s0, %s1153_s0 }
  0x3f   :  { %p1160_p2 = por %p1159_p1, %p1158_p0 }
  0x41   :  { %p1161_p3 = pnand %p1160_p2, %p1154_p13 }
  0x43   :  { %1164 = shalt.err (!%p1161_p3)
}
  0x44   :  { %54 = dma.hbm_to_vmem [thread:$0]  %s1557_s3, 256, %s49_s13, [#allocation6], %s1218_s23, %s1218_s23, %s1219_s24  }
  0x45   :  { %s1165_s27 = scalar_lea.hbm %s1560_s6, 256 }
  0x46   :  { %p1166_p4 = scmp.ne.s32.totalorder %s1560_s6, %s1165_s27  ;;  %p1169_p5 = scmp.lt.u32.totalorder %s1165_s27, %s1560_s6 }
  0x48   :  { %p1171_p6 = pnand %p1169_p5, %p1166_p4 }
  0x4a   :  { %1174 = shalt.err (!%p1171_p6)
}
  0x4b   :  { %s1175_s12 = scalar_lea.vmem %s75_s16, 256  ;;  %p1180_p8 = scmp.lt.s32.totalorder %s75_s16, %s75_s16 }
  0x4c   :  { %p1176_p7 = scmp.ne.s32.totalorder %s75_s16, %s1175_s12  ;;  %p1181_p9 = scmp.lt.s32.totalorder %s1175_s12, %s1175_s12 }
  0x4e   :  { %p1182_p10 = por %p1181_p9, %p1180_p8 }
  0x50   :  { %p1183_p11 = pnand %p1182_p10, %p1176_p7 }
  0x52   :  { %1186 = shalt.err (!%p1183_p11)
}
  0x53   :  { %80 = dma.hbm_to_vmem [thread:$0]  %s1560_s6, 256, %s75_s16, [#allocation9], %s1218_s23, %s1218_s23, %s1219_s24  }
  0x54   :  { %1209 = dma.done.wait [#allocation3], 128  }
  0x55   :  { %1210 = vsyncadd [#allocation3], 4294967168 }
  0x56   :  { %1211 = dma.done.wait [#allocation6], 384  }
  0x57   :  { %1212 = vsyncadd [#allocation6], 4294966912 }
  0x58   :  { %1213 = dma.done.wait [#allocation9], 512  }
  0x59   :  { %1214 = vsyncadd [#allocation9], 4294966784  ;;  %v1224_v0 = vmov 0.0   ;;  %vm1225_vm0 = vmmov 0   ;;  %v1047_v1 = vld [vmem:[#allocation5] sm:$0xff]   ;;  %v106_v2 = vld [vmem:[#allocation2] sm:$0xff]  ;;  %v110_v4 = vlaneseq }
  0x5a   :  { %971 = vmatprep.subr.bf16.mxu0 %v1224_v0  ;;  %973 = vmatprep.mubr.msk.bf16.mxu0 %vm1225_vm0, %v1224_v0  ;;  %vm120_vm1 = vcmask 130048   ;;  %v107_v3 = vpack.c.bf16 %v106_v2, %v106_v2  ;;  %v1377_v7 = vld [vmem:[%s1555_s1] sm:$0xff]  ;;  %vm164_vm2 = vcmask 261120   ;;  %v1048_v17 = vld [vmem:[#allocation7] sm:$0xff]   ;;  %v1049_v18 = vld [vmem:[#allocation7 + $0x8] sm:$0xff]   ;;  %s1227_s19 = smov 96  }
  0x5b   :  { %977 = vmatprep.subr.bf16.mxu1 %v1224_v0  ;;  %981 = vmatprep.mubr.msk.bf16.mxu1 %vm1225_vm0, %v1224_v0  ;;  %v1369_v5 = vshrl.u32 %v110_v4, 7  ;;  %v1050_v48 = vld [vmem:[%s1558_s4] sm:$0xff]   ;;  %v1051_v49 = vld [vmem:[%s1558_s4 + $0x8] sm:$0xff]   ;;  %s1228_s0 = smov 32   ;;  %s1229_s30 = smov 112   ;;  %vm767_vm3 = vcmask 64512  }
  0x5c   :  { %972 = vmatpush3.bf16.msra.mxu0 %v1047_v1  ;;  %978 = vmatpush3.bf16.msra.mxu1 %v1048_v17  ;;  %vm804_vm4 = vcmask 1043456  }
  0x5d   :  { %985 = vmatprep.subr.bf16.mxu0 %v1224_v0  ;;  %v1372_v6 = vsub.s32 0, %v1369_v5  ;;  %979 = vmatprep.subr.bf16.mxu1 %v1224_v0  ;;  %v1386_v27 = vsub.s32 1, %v1369_v5  ;;  %v1389_v28 = vsub.s32 2, %v1369_v5  ;;  %v1399_v38 = vsub.s32 3, %v1369_v5 }
  0x5e   :  { %v1414_v58 = vsub.s32 4, %v1369_v5  ;;  %v1417_v59 = vsub.s32 5, %v1369_v5 }
  0x5f   :  { %974 = vmatmul.mubr.msk.bf16.vlgmr.msra.gmra.mrb[0].mxu0 %vm120_vm1, %v107_v3  ;;  %v113_v8 = vrot.slane %v1377_v7, %v1372_v6  ;;  %v185_v30 = vrot.slane %v1377_v7, %v1386_v27  ;;  %v190_v33 = vrot.slane %v1377_v7, %v1389_v28  ;;  %v201_v39 = vrot.slane %v1377_v7, %v1399_v38 }
  0x60   :  { %989 = vmatprep.mubr.msk.bf16.mxu0 %vm1225_vm0, %v1224_v0  ;;  %980 = vmatpush3.bf16.msra.mxu1 %v1049_v18  ;;  %v276_v61 = vrot.slane %v1377_v7, %v1414_v58  ;;  %v281_v1 = vrot.slane %v1377_v7, %v1417_v59 }
  0x61   :  { %993 = vmatprep.subr.bf16.mxu1 %v1224_v0  ;;  %986 = vmatpush3.bf16.msra.mxu0 %v1050_v48 }
  0x62   :  { %987 = vmatprep.subr.bf16.mxu0 %v1224_v0 }
  0x65   :  { %988 = vmatpush3.bf16.msra.mxu0 %v1051_v49 }
  0x66   :  { %1001 = vmatprep.subr.bf16.mxu0 %v1224_v0 }
 0x132   :  { %v158_v9 = vpop.f32.mrb[0].mxu0 }
 0x133   :  { %v159_v10 = vadd.f32 %v158_v9, %v113_v8  ;;  %v975_v11 = vpop.f32.mrb[1].mxu0 }
 0x134   :  { %v161_v12 = vpop.f32.mrb[2].mxu0 }
 0x135   :  { %v976_v13 = vpop.f32.mrb[3].mxu0  ;;  %v165_v14 = vsel %vm164_vm2, %v159_v10, 0.0  ;;  %v170_v15 = vmul.f32 %v159_v10, %v159_v10 }
 0x136   :  { %166 = vadd.xlane.f32.xlu0 %v165_v14 }
 0x137   :  { %v171_v16 = vsel %vm164_vm2, %v170_v15, 0.0 }
 0x13a   :  { %172 = vadd.xlane.f32.xlu0 %v171_v16 }
 0x1c3   :  { %v167_v19 = vpop.xlane.xlu0 %166 }
 0x1c4   :  { %v169_v20 = vmul.f32 0.03125, %v167_v19 }
 0x1c6   :  { %v175_v22 = vmul.f32 %v169_v20, %v169_v20  ;;  %v178_v29 = vsub.f32 %v159_v10, %v169_v20  ;;  %v1427_v10 = vsub.s32 6, %v1369_v5  ;;  %v1052_v20 = vld [vmem:[#allocation8] sm:$0xff]  }
 0x1c7   :  { %v173_v21 = vpop.xlane.xlu0 %172 }
 0x1c8   :  { %v174_v23 = vmul.f32 0.03125, %v173_v21  ;;  %v292_v11 = vrot.slane %v1377_v7, %v1427_v10  ;;  %v1053_v21 = vld [vmem:[#allocation8 + $0x8] sm:$0xff]  }
 0x1ca   :  { %v176_v24 = vsub.f32 %v174_v23, %v175_v22 }
 0x1cc   :  { %v177_v25 = vmax.f32 %v176_v24, 0.0 }
 0x1ce   :  { %v179_v26 = vadd.f32 1e-05, %v177_v25 }
 0x1d0   :  { %1059 = vrsqrt.f32 %v179_v26 }
 0x1da   :  { %v1060_v31 = vpop.eup %1059 }
 0x1db   :  { %v181_v32 = vmul.f32 %v1060_v31, %v178_v29 }
 0x1dd   :  { %v186_v34 = vmul.f32 %v185_v30, %v181_v32  ;;  %v1436_v32 = vsub.s32 7, %v1369_v5 }
 0x1df   :  { %v191_v35 = vadd.f32 %v190_v33, %v186_v34  ;;  %v1441_v33 = vld [vmem:[%s1555_s1 + $0x8] sm:$0xff] }
 0x1e0   :  { %v383_v5 = vrot.slane %v1441_v33, %v1386_v27 }
 0x1e1   :  { %v192_v36 = vmax.f32 %v191_v35, 0.0  ;;  %v367_v35 = vrot.slane %v1377_v7, %v1436_v32 }
 0x1e3   :  { %v193_v37 = vpack.c.bf16 %v192_v36, %v192_v36 }
 0x1e5   :  { %982 = vmatmul.mubr.msk.bf16.vlgmr.msra.gmra.mrb[0].mxu1 %vm164_vm2, %v193_v37  ;;  %v372_v37 = vrot.slane %v1441_v33, %v1372_v6 }
 0x1e6   :  { %997 = vmatprep.mubr.msk.bf16.mxu1 %vm1225_vm0, %v1224_v0  ;;  %994 = vmatpush3.bf16.msra.mxu1 %v1052_v20 }
 0x1e7   :  { %995 = vmatprep.subr.bf16.mxu1 %v1224_v0 }
 0x1ea   :  { %996 = vmatpush3.bf16.msra.mxu1 %v1053_v21 }
 0x1eb   :  { %1009 = vmatprep.subr.bf16.mxu1 %v1224_v0 }
 0x2b8   :  { %v251_v40 = vpop.f32.mrb[0].mxu1 }
 0x2b9   :  { %v252_v41 = vadd.f32 %v251_v40, %v201_v39  ;;  %v983_v42 = vpop.f32.mrb[1].mxu1 }
 0x2ba   :  { %v254_v43 = vpop.f32.mrb[2].mxu1 }
 0x2bb   :  { %v984_v44 = vpop.f32.mrb[3].mxu1  ;;  %v257_v45 = vsel %vm164_vm2, %v252_v41, 0.0  ;;  %v261_v46 = vmul.f32 %v252_v41, %v252_v41 }
 0x2bc   :  { %258 = vadd.xlane.f32.xlu1 %v257_v45 }
 0x2bd   :  { %v262_v47 = vsel %vm164_vm2, %v261_v46, 0.0 }
 0x2c0   :  { %263 = vadd.xlane.f32.xlu1 %v262_v47 }
 0x349   :  { %v259_v50 = vpop.xlane.xlu1 %258 }
 0x34a   :  { %v260_v51 = vmul.f32 0.03125, %v259_v50 }
 0x34c   :  { %v266_v53 = vmul.f32 %v260_v51, %v260_v51  ;;  %v269_v60 = vsub.f32 %v252_v41, %v260_v51  ;;  %v1054_v51 = vld [vmem:[#allocation10] sm:$0xff]  }
 0x34d   :  { %v264_v52 = vpop.xlane.xlu1 %263 }
 0x34e   :  { %v265_v54 = vmul.f32 0.03125, %v264_v52  ;;  %v1055_v52 = vld [vmem:[#allocation10 + $0x8] sm:$0xff]  }
 0x350   :  { %v267_v55 = vsub.f32 %v265_v54, %v266_v53 }
 0x352   :  { %v268_v56 = vmax.f32 %v267_v55, 0.0 }
 0x354   :  { %v270_v57 = vadd.f32 1e-05, %v268_v56 }
 0x356   :  { %1061 = vrsqrt.f32 %v270_v57 }
 0x360   :  { %v1062_v62 = vpop.eup %1061 }
 0x361   :  { %v272_v63 = vmul.f32 %v1062_v62, %v269_v60 }
 0x363   :  { %v277_v2 = vmul.f32 %v276_v61, %v272_v63 }
 0x365   :  { %v282_v3 = vadd.f32 %v281_v1, %v277_v2  ;;  %v458_v1 = vrot.slane %v1441_v33, %v1389_v28 }
 0x367   :  { %v283_v8 = vmax.f32 %v282_v3, 0.0  ;;  %v463_v3 = vrot.slane %v1441_v33, %v1399_v38 }
 0x369   :  { %v284_v9 = vpack.c.bf16 %v283_v8, %v283_v8 }
 0x36b   :  { %990 = vmatmul.mubr.msk.bf16.vlgmr.msra.gmra.mrb[4].mxu0 %vm164_vm2, %v284_v9 }
 0x36c   :  { %1005 = vmatprep.mubr.msk.bf16.mxu0 %vm1225_vm0, %v1224_v0  ;;  %1002 = vmatpush3.bf16.msra.mxu0 %v1054_v51 }
 0x36d   :  { %1003 = vmatprep.subr.bf16.mxu0 %v1224_v0 }
 0x370   :  { %1004 = vmatpush3.bf16.msra.mxu0 %v1055_v52 }
 0x371   :  { %1015 = vmatprep.subr.bf16.mxu0 %v1224_v0 }
 0x43e   :  { %v342_v12 = vpop.f32.mrb[4].mxu0 }
 0x43f   :  { %v343_v13 = vadd.f32 %v342_v12, %v292_v11  ;;  %v991_v14 = vpop.f32.mrb[5].mxu0 }
 0x440   :  { %v345_v15 = vpop.f32.mrb[6].mxu0  ;;  %v529_v14 = vrot.slane %v1441_v33, %v1414_v58 }
 0x441   :  { %v992_v16 = vpop.f32.mrb[7].mxu0  ;;  %v348_v17 = vsel %vm164_vm2, %v343_v13, 0.0  ;;  %v352_v18 = vmul.f32 %v343_v13, %v343_v13 }
 0x442   :  { %349 = vadd.xlane.f32.xlu0 %v348_v17 }
 0x443   :  { %v353_v19 = vsel %vm164_vm2, %v352_v18, 0.0 }
 0x444   :  { %354 = vadd.xlane.f32.xlu1 %v353_v19 }
 0x4cf   :  { %v350_v22 = vpop.xlane.xlu0 %349 }
 0x4d0   :  { %v351_v23 = vmul.f32 0.03125, %v350_v22 }
 0x4d1   :  { %v355_v24 = vpop.xlane.xlu1 %354 }
 0x4d2   :  { %v357_v25 = vmul.f32 %v351_v23, %v351_v23  ;;  %v356_v26 = vmul.f32 0.03125, %v355_v24  ;;  %v360_v34 = vsub.f32 %v343_v13, %v351_v23  ;;  %v1056_v23 = vld [vmem:[%s1561_s7] sm:$0xff]   ;;  %s1226_s7 = smov 16  }
 0x4d4   :  { %v358_v29 = vsub.f32 %v356_v26, %v357_v25 }
 0x4d6   :  { %v359_v30 = vmax.f32 %v358_v29, 0.0 }
 0x4d8   :  { %v361_v31 = vadd.f32 1e-05, %v359_v30 }
 0x4da   :  { %1063 = vrsqrt.f32 %v361_v31 }
 0x4e4   :  { %v1064_v36 = vpop.eup %1063 }
 0x4e5   :  { %v363_v39 = vmul.f32 %v1064_v36, %v360_v34 }
 0x4e7   :  { %v368_v40 = vmul.f32 %v367_v35, %v363_v39 }
 0x4e9   :  { %v373_v41 = vadd.f32 %v372_v37, %v368_v40  ;;  %v551_v37 = vrot.slane %v1441_v33, %v1417_v59  ;;  %v556_v40 = vrot.slane %v1441_v33, %v1427_v10 }
 0x4eb   :  { %v374_v42 = vmax.f32 %v373_v41, 0.0 }
 0x4ed   :  { %v375_v43 = vpack.c.bf16 %v374_v42, %v374_v42 }
 0x4ef   :  { %998 = vmatmul.mubr.msk.bf16.vlgmr.msra.gmra.mrb[4].mxu1 %vm164_vm2, %v375_v43 }
 0x4f0   :  { %1011 = vmatprep.mubr.msk.bf16.mxu1 %vm1225_vm0, %v1224_v0  ;;  %1010 = vmatpush3.bf16.msra.mxu1 %v1056_v23 }
 0x4f1   :  { %1021 = vmatprep.subr.bf16.mxu1 %v1224_v0 }
 0x5c2   :  { %v433_v44 = vpop.f32.mrb[4].mxu1 }
 0x5c3   :  { %v434_v45 = vadd.f32 %v433_v44, %v383_v5  ;;  %v999_v7 = vpop.f32.mrb[5].mxu1 }
 0x5c4   :  { %v436_v46 = vpop.f32.mrb[6].mxu1 }
 0x5c5   :  { %v1000_v47 = vpop.f32.mrb[7].mxu1  ;;  %v439_v48 = vsel %vm164_vm2, %v434_v45, 0.0  ;;  %v443_v49 = vmul.f32 %v434_v45, %v434_v45 }
 0x5c6   :  { %440 = vadd.xlane.f32.xlu0 %v439_v48 }
 0x5c7   :  { %v444_v50 = vsel %vm164_vm2, %v443_v49, 0.0 }
 0x5c8   :  { %445 = vadd.xlane.f32.xlu1 %v444_v50 }
 0x653   :  { %v441_v53 = vpop.xlane.xlu0 %440 }
 0x654   :  { %v442_v54 = vmul.f32 0.03125, %v441_v53 }
 0x655   :  { %v446_v55 = vpop.xlane.xlu1 %445 }
 0x656   :  { %v448_v56 = vmul.f32 %v442_v54, %v442_v54  ;;  %v447_v57 = vmul.f32 0.03125, %v446_v55  ;;  %v451_v63 = vsub.f32 %v434_v45, %v442_v54  ;;  %v619_v45 = vrot.slane %v1441_v33, %v1436_v32 }
 0x658   :  { %v449_v60 = vsub.f32 %v447_v57, %v448_v56  ;;  %v1494_v57 = vld [vmem:[%s1555_s1 + $0x10] sm:$0xff] }
 0x65a   :  { %v450_v61 = vmax.f32 %v449_v60, 0.0  ;;  %v701_v60 = vrot.slane %v1494_v57, %v1399_v38 }
 0x65c   :  { %v452_v62 = vadd.f32 1e-05, %v450_v61  ;;  %v692_v61 = vrot.slane %v1494_v57, %v1389_v28 }
 0x65e   :  { %1065 = vrsqrt.f32 %v452_v62  ;;  %v1057_v62 = vld [vmem:[%s1562_s8] sm:$0xff]  }
 0x668   :  { %v1066_v2 = vpop.eup %1065 }
 0x669   :  { %v454_v8 = vmul.f32 %v1066_v2, %v451_v63 }
 0x66b   :  { %v459_v9 = vmul.f32 %v458_v1, %v454_v8 }
 0x66d   :  { %v464_v11 = vadd.f32 %v463_v3, %v459_v9 }
 0x66f   :  { %v465_v12 = vmax.f32 %v464_v11, 0.0 }
 0x671   :  { %v466_v13 = vpack.c.bf16 %v465_v12, %v465_v12 }
 0x673   :  { %1006 = vmatmul.mubr.msk.bf16.vlgmr.msra.gmra.mrb[8].mxu0 %vm164_vm2, %v466_v13 }
 0x674   :  { %1017 = vmatprep.mubr.msk.bf16.mxu0 %vm1225_vm0, %v1224_v0  ;;  %1016 = vmatpush3.bf16.msra.mxu0 %v1057_v62 }
 0x675   :  { %1027 = vmatprep.subr.bf16.mxu0 %v1224_v0 }
 0x746   :  { %v520_v15 = vpop.f32.mrb[8].mxu0 }
 0x747   :  { %v530_v16 = vadd.f32 %v529_v14, %v520_v15  ;;  %v1007_v17 = vpop.f32.mrb[9].mxu0 }
 0x748   :  { %v523_v18 = vpop.f32.mrb[10].mxu0 }
 0x749   :  { %v1008_v19 = vpop.f32.mrb[11].mxu0  ;;  %v531_v20 = vsel %vm120_vm1, %v530_v16, 0.0  ;;  %v536_v21 = vmul.f32 %v530_v16, %v530_v16 }
 0x74a   :  { %532 = vadd.xlane.f32.xlu0 %v531_v20 }
 0x74b   :  { %v537_v22 = vsel %vm120_vm1, %v536_v21, 0.0 }
 0x74c   :  { %538 = vadd.xlane.f32.xlu1 %v537_v22  ;;  %v661_v22 = vrot.slane %v1494_v57, %v1386_v27 }
 0x75d   :  { %621 = vrot.lane.b32.xlu1 %v619_v45, %s1226_s7 }
 0x7d7   :  { %v533_v24 = vpop.xlane.xlu0 %532 }
 0x7d8   :  { %v535_v25 = vmul.f32 0.0625, %v533_v24 }
 0x7d9   :  { %v539_v26 = vpop.xlane.xlu1 %538 }
 0x7da   :  { %v541_v29 = vmul.f32 %v535_v25, %v535_v25  ;;  %v540_v30 = vmul.f32 0.0625, %v539_v26  ;;  %v544_v36 = vsub.f32 %v530_v16, %v535_v25  ;;  %v652_v26 = vrot.slane %v1494_v57, %v1372_v6 }
 0x7dc   :  { %v542_v31 = vsub.f32 %v540_v30, %v541_v29 }
 0x7dd   :  { %v622_v50 = vpop.permute.xlu1 %621 }
 0x7de   :  { %v543_v34 = vmax.f32 %v542_v31, 0.0 }
 0x7e0   :  { %v545_v35 = vadd.f32 1e-05, %v543_v34 }
 0x7e2   :  { %1067 = vrsqrt.f32 %v545_v35 }
 0x7ec   :  { %v1068_v39 = vpop.eup %1067 }
 0x7ed   :  { %v547_v41 = vmul.f32 %v1068_v39, %v544_v36 }
 0x7ef   :  { %v552_v42 = vmul.f32 %v551_v37, %v547_v41 }
 0x7f1   :  { %v557_v43 = vadd.f32 %v556_v40, %v552_v42 }
 0x7f3   :  { %v558_v5 = vmax.f32 %v557_v43, 0.0 }
 0x7f5   :  { %v559_v44 = vpack.c.bf16 %v558_v5, %v558_v5 }
 0x7f7   :  { %1012 = vmatmul.mubr.msk.bf16.vlgmr.msra.gmra.mrb[8].mxu1 %vm120_vm1, %v559_v44 }
 0x7f8   :  { %1023 = vmatprep.mubr.msk.bf16.mxu1 %vm1225_vm0, %v1224_v0 }
 0x8ca   :  { %v605_v7 = vpop.f32.mrb[8].mxu1 }
 0x8cb   :  { %612 = vrot.lane.b32.xlu0 %v605_v7, %s1226_s7  ;;  %v1013_v46 = vpop.f32.mrb[9].mxu1 }
 0x8cc   :  { %v608_v47 = vpop.f32.mrb[10].mxu1 }
 0x8cd   :  { %v1014_v48 = vpop.f32.mrb[11].mxu1 }
 0x93d   :  { %v613_v49 = vpop.permute.xlu0 %612 }
 0x93e   :  { %v615_v51 = vadd.f32 %v613_v49, %v520_v15 }
 0x940   :  { %v1482_v52 = vadd.f32 %v622_v50, %v615_v51  ;;  %v1058_v50 = vld [vmem:[%s1563_s9] sm:$0xff]  }
 0x942   :  { %668 = vrot.lane.b32.xlu1 %v1482_v52, %s1227_s19  ;;  %v633_v33 = vmul.f32 %v1482_v52, %v1482_v52 }
 0x946   :  { %675 = vrot.lane.b32.xlu1 %v633_v33, %s1227_s19 }
 0x9b4   :  { %v669_v53 = vpop.permute.xlu1 %668 }
 0x9b5   :  { %v671_v54 = vsel %vm120_vm1, %v669_v53, 0.0  ;;  %v798_v53 = vld [vmem:[%s1563_s9 + $0x8] sm:$0xf]  ;;  %s1230_s9 = smov [#allocation11]  }
 0x9b6   :  { %672 = vadd.xlane.f32.xlu0 %v671_v54  ;;  %s917_s29 = sshll.u32 %s1230_s9, 4  ;;  %s918_s29 = int_to_ptr.vmem [resolvable:$true] %s917_s29 }
 0x9b7   :  { %s1187_s11 = scalar_lea.vmem %s918_s29, 128  ;;  %p1192_p13 = scmp.lt.s32.totalorder %s918_s29, %s918_s29 }
 0x9b8   :  { %v676_v55 = vpop.permute.xlu1 %675  ;;  %p1188_p12 = scmp.ne.s32.totalorder %s918_s29, %s1187_s11  ;;  %p1193_p0 = scmp.lt.s32.totalorder %s1187_s11, %s1187_s11 }
 0x9b9   :  { %v678_v56 = vsel %vm120_vm1, %v676_v55, 0.0 }
 0x9ba   :  { %679 = vadd.xlane.f32.xlu1 %v678_v56  ;;  %p1194_p1 = por %p1193_p0, %p1192_p13 }
 0x9bc   :  { %p1195_p2 = pnand %p1194_p1, %p1188_p12 }
 0x9cb   :  { %703 = vrot.lane.b32.xlu1 %v701_v60, %s1228_s0 }
 0x9cc   :  { %694 = vrot.lane.b32.xlu0 %v692_v61, %s1228_s0 }
 0x9cf   :  { %626 = vrot.lane.b32.xlu1 %v1482_v52, %s1229_s30 }
 0xa43   :  { %v673_v63 = vpop.xlane.xlu0 %672 }
 0xa44   :  { %v674_v1 = vmul.f32 0.0625, %v673_v63 }
 0xa46   :  { %v682_v2 = vmul.f32 %v674_v1, %v674_v1  ;;  %v685_v14 = vsub.f32 %v1482_v52, %v674_v1 }
 0xa47   :  { %v680_v38 = vpop.xlane.xlu1 %679  ;;  %v695_v16 = vpop.permute.xlu0 %694 }
 0xa48   :  { %v681_v3 = vmul.f32 0.0625, %v680_v38 }
 0xa4a   :  { %v683_v28 = vsub.f32 %v681_v3, %v682_v2  ;;  %v788_v3 = vrot.slane %v1494_v57, %v1417_v59 }
 0xa4b   :  { %v704_v8 = vpop.permute.xlu1 %703 }
 0xa4c   :  { %v684_v9 = vmax.f32 %v683_v28, 0.0 }
 0xa4e   :  { %v686_v11 = vadd.f32 1e-05, %v684_v9 }
 0xa4f   :  { %v627_v12 = vpop.permute.xlu1 %626 }
 0xa50   :  { %1069 = vrsqrt.f32 %v686_v11  ;;  %v629_v13 = vsel %vm120_vm1, %v627_v12, 0.0 }
 0xa51   :  { %630 = vadd.xlane.f32.xlu1 %v629_v13 }
 0xa5a   :  { %v1070_v15 = vpop.eup %1069 }
 0xa5b   :  { %v688_v17 = vmul.f32 %v1070_v15, %v685_v14 }
 0xa5d   :  { %v697_v18 = vmul.f32 %v695_v16, %v688_v17 }
 0xa5f   :  { %v706_v19 = vadd.f32 %v704_v8, %v697_v18  ;;  %v793_v8 = vrot.slane %v1494_v57, %v1427_v10 }
 0xa61   :  { %v707_v20 = vmax.f32 %v706_v19, 0.0  ;;  %v903_v19 = vrot.slane %v1494_v57, %v1436_v32 }
 0xa62   :  { %663 = vrot.lane.b32.xlu1 %v661_v22, %s1226_s7 }
 0xa63   :  { %v708_v21 = vpack.c.bf16 %v707_v20, %v707_v20 }
 0xa65   :  { %716 = vrot.lane.b32.xlu0 %v708_v21, %s1227_s19 }
 0xa69   :  { %635 = vrot.lane.b32.xlu0 %v633_v33, %s1229_s30 }
 0xad7   :  { %v717_v23 = vpop.permute.xlu0 %716 }
 0xad8   :  { %1018 = vmatmul.mubr.msk.bf16.vlgmr.msra.gmra.mrb[12].mxu0 %vm120_vm1, %v717_v23 }
 0xad9   :  { %1029 = vmatprep.mubr.msk.bf16.mxu0 %vm1225_vm0, %v1224_v0  ;;  %v714_v0 = vrot.slane %v1494_v57, %v1414_v58  ;;  %1028 = vmatpush3.bf16.msra.mxu0 %v1058_v50 }
 0xadb   :  { %v636_v24 = vpop.permute.xlu0 %635 }
 0xadc   :  { %v638_v25 = vsel %vm120_vm1, %v636_v24, 0.0  ;;  %v906_v24 = vand.u32 127, %v110_v4 }
 0xadd   :  { %639 = vadd.xlane.f32.xlu0 %v638_v25 }
 0xade   :  { %v631_v29 = vpop.xlane.xlu1 %630  ;;  %vm907_vm5 = vcmp.lt.s32.totalorder %v906_v24, 4 }
 0xadf   :  { %v632_v27 = vmul.f32 0.0625, %v631_v29 }
 0xae1   :  { %v642_v34 = vmul.f32 %v632_v27, %v632_v27  ;;  %v645_v7 = vsub.f32 %v1482_v52, %v632_v27  ;;  %v806_v52 = vsel %vm804_vm4, %v798_v53, 0 }
 0xae2   :  { %v664_v58 = vpop.permute.xlu1 %663  ;;  %1022 = vmatpush3.bf16.msra.mxu1 %v806_v52 }
 0xaf3   :  { %654 = vrot.lane.b32.xlu0 %v652_v26, %s1226_s7 }
 0xb6a   :  { %v640_v30 = vpop.xlane.xlu0 %639 }
 0xb6b   :  { %v641_v31 = vmul.f32 0.0625, %v640_v30 }
 0xb6d   :  { %v643_v35 = vsub.f32 %v641_v31, %v642_v34 }
 0xb6e   :  { %v655_v47 = vpop.permute.xlu0 %654 }
 0xb6f   :  { %v644_v36 = vmax.f32 %v643_v35, 0.0 }
 0xb71   :  { %v646_v37 = vadd.f32 1e-05, %v644_v36 }
 0xb73   :  { %1071 = vrsqrt.f32 %v646_v37 }
 0xb7d   :  { %v1072_v45 = vpop.eup %1071 }
 0xb7e   :  { %v648_v46 = vmul.f32 %v1072_v45, %v645_v7 }
 0xb80   :  { %v657_v48 = vmul.f32 %v655_v47, %v648_v46 }
 0xb82   :  { %v666_v49 = vadd.f32 %v664_v58, %v657_v48 }
 0xb84   :  { %v667_v51 = vmax.f32 %v666_v49, 0.0 }
 0xb86   :  { %v799_v33 = vpack.c.bf16 %v667_v51, %v667_v51 }
 0xbab   :  { %v761_v39 = vpop.f32.mrb[12].mxu0 }
 0xbac   :  { %v762_v40 = vadd.f32 %v761_v39, %v714_v0  ;;  %v1019_v41 = vpop.f32.mrb[13].mxu0 }
 0xbad   :  { %v764_v42 = vpop.f32.mrb[14].mxu0 }
 0xbae   :  { %v1020_v6 = vpop.f32.mrb[15].mxu0  ;;  %v768_v43 = vsel %vm767_vm3, %v762_v40, 0.0  ;;  %v773_v5 = vmul.f32 %v762_v40, %v762_v40 }
 0xbaf   :  { %769 = vadd.xlane.f32.xlu1 %v768_v43 }
 0xbb0   :  { %v774_v44 = vsel %vm767_vm3, %v773_v5, 0.0 }
 0xbb1   :  { %775 = vadd.xlane.f32.xlu0 %v774_v44 }
 0xbc7   :  { %849 = vrot.lane.b32.xlu0 %v799_v33, %s1229_s30 }
 0xc3c   :  { %v770_v54 = vpop.xlane.xlu1 %769 }
 0xc3d   :  { %v772_v55 = vmul.f32 0.125, %v770_v54 }
 0xc3e   :  { %v776_v56 = vpop.xlane.xlu0 %775 }
 0xc3f   :  { %v778_v60 = vmul.f32 %v772_v55, %v772_v55  ;;  %v777_v61 = vmul.f32 0.125, %v776_v56  ;;  %v781_v2 = vsub.f32 %v762_v40, %v772_v55 }
 0xc41   :  { %v779_v62 = vsub.f32 %v777_v61, %v778_v60 }
 0xc42   :  { %v850_v63 = vpop.permute.xlu0 %849 }
 0xc43   :  { %v780_v1 = vmax.f32 %v779_v62, 0.0  ;;  %1030 = vmatmul.mubr.msk.bf16.vlgmr.msra.gmra.mrb[16].mxu0 %vm120_vm1, %v850_v63 }
 0xc45   :  { %v782_v38 = vadd.f32 1e-05, %v780_v1 }
 0xc47   :  { %1073 = vrsqrt.f32 %v782_v38 }
 0xc51   :  { %v1074_v28 = vpop.eup %1073 }
 0xc52   :  { %v784_v9 = vmul.f32 %v1074_v28, %v781_v2 }
 0xc54   :  { %v789_v11 = vmul.f32 %v788_v3, %v784_v9 }
 0xc56   :  { %v794_v12 = vadd.f32 %v793_v8, %v789_v11 }
 0xc58   :  { %v795_v13 = vmax.f32 %v794_v12, 0.0 }
 0xc5a   :  { %v800_v14 = vpack.c.bf16 %v795_v13, %v795_v13 }
 0xc5c   :  { %1024 = vmatmul.mubr.msk.bf16.vlgmr.msra.gmra.mrb[12].mxu1 %vm767_vm3, %v800_v14 }
 0xd16   :  { %v894_v15 = vpop.f32.mrb[16].mxu0 }
 0xd17   :  { %v1031_v16 = vpop.f32.mrb[17].mxu0 }
 0xd18   :  { %v897_v17 = vpop.f32.mrb[18].mxu0 }
 0xd19   :  { %v1032_v18 = vpop.f32.mrb[19].mxu0 }
 0xd2f   :  { %v842_v20 = vpop.f32.mrb[12].mxu1 }
 0xd30   :  { %v895_v59 = vadd.f32 %v894_v15, %v842_v20  ;;  %v1025_v21 = vpop.f32.mrb[13].mxu1 }
 0xd31   :  { %v845_v22 = vpop.f32.mrb[14].mxu1 }
 0xd32   :  { %v904_v23 = vadd.f32 %v903_v19, %v895_v59  ;;  %v1026_v10 = vpop.f32.mrb[15].mxu1 }
 0xd34   :  { %1075 = vtanh.f32 %v904_v23 }
 0xd3e   :  { %v1076_v25 = vpop.eup %1075 }
 0xd3f   :  { %v909_v26 = vsel %vm907_vm5, %v1076_v25, %v904_v23 }
 0xd40   :  { %910 = vst.msk [vmem:[#allocation11] sm:$0xff] %vm767_vm3, %v909_v26 }
 0xd41   :  { %1198 = shalt.err (!%p1195_p2)
}
 0xd42   :  { %s1199_s12 = scalar_lea.hbm %s1564_s10, 128 }
 0xd43   :  { %p1200_p3 = scmp.ne.s32.totalorder %s1564_s10, %s1199_s12  ;;  %p1203_p4 = scmp.lt.u32.totalorder %s1199_s12, %s1564_s10 }
 0xd45   :  { %p1205_p5 = pnand %p1203_p4, %p1200_p3 }
 0xd47   :  { %1208 = shalt.err (!%p1205_p5)
}
 0xd48   :  { %920 = dma.vmem_to_hbm [thread:$0]  %s918_s29, 128, %s1564_s10, [#allocation4]  }
 0xd49   :  { %1215 = dma.done.wait [#allocation4], 128  }
 0xd4a   :  { %1216 = vsyncadd [#allocation4], 4294967168 }
 0xd4b   :  { %924 = vsyncpa [#allocation3], 1 }
 0xd4c   :  { %925 = vsyncpa [#allocation6], 1 }
 0xd4d   :  { %926 = vsyncpa [#allocation9], 1 }
 0xd4e   :  { %927 = vsyncpa [#allocation4], 1 }

</bundles_post_ra>
